<compile_context>
chip_gen: v5e
topology: v5e:2x2
jax: 0.10.0
libtpu: 0.0.40
codegen_flags: <defaults>
</compile_context>

<pallas_src>
import functools
import math

import jax
import jax.numpy as jnp
from jax import lax
from jax.experimental import pallas as pl
from jax.experimental.pallas import tpu as pltpu


def _attn_head_kernel(h_ref, mask_ref, w_ref, b_ref, ctx_ref, probs_ref,
                      *, head_size: int):
    """One (batch element, head) pair per grid step."""
    d = head_size
    x = h_ref[0]                       # (S, H)  bf16
    w = w_ref[0]                       # (H, 3d) bf16, columns = [Wq_h|Wk_h|Wv_h]
    bias = b_ref[0]                    # (1, 3d) f32

    # Fused Q/K/V projection for this head: one MXU pass, f32 accumulation.
    qkv = jnp.dot(x, w, preferred_element_type=jnp.float32) + bias    # (S, 3d)

    inv_sqrt_d = 1.0 / math.sqrt(d)
    q = (qkv[:, 0:d] * inv_sqrt_d).astype(jnp.bfloat16)   # scale folded into Q
    k = qkv[:, d:2 * d].astype(jnp.bfloat16)
    v = qkv[:, 2 * d:3 * d].astype(jnp.bfloat16)

    # Q @ K^T without materializing the transpose: contract last dims of both.
    scores = lax.dot_general(q, k,
                             dimension_numbers=(((1,), (1,)), ((), ())),
                             preferred_element_type=jnp.float32)       # (S, S)
    scores = scores + mask_ref[0]      # additive key mask, broadcast over rows

    # Numerically-stable softmax; the divide goes to the EUP as approx recip.
    m = jnp.max(scores, axis=-1, keepdims=True)
    e = jnp.exp(scores - m)
    denom = jnp.sum(e, axis=-1, keepdims=True)
    probs = e * pl.reciprocal(denom, approx=True)

    # TODO(synk): attention-probs dropout omitted (eval mode => identity).
    probs_ref[0, 0] = probs                                            # (S, S)
    ctx_ref[0, 0] = jnp.dot(probs.astype(jnp.bfloat16), v,
                            preferred_element_type=jnp.float32)        # (S, d)


def self_attention(hidden_states, attention_mask, wq, bq, wk, bk, wv, bv,
                   num_attention_heads):
    """hidden_states: [B,S,H]; attention_mask: [B,1,1,S] additive (BERT style).
    wq/wk/wv: [H_out, H_in] (PyTorch Linear convention); bq/bk/bv: [H]."""
    B, S, H = hidden_states.shape
    nh = num_attention_heads
    d = H // nh

    # Per-head fused QKV weights: (nh, H, 3d), bf16 (MXU-friendly, half the DMA).
    def per_head(w):                   # (H_out, H_in) -> (nh, H_in, d)
        return jnp.transpose(w.T.reshape(H, nh, d), (1, 0, 2))

    wqkv = jnp.concatenate([per_head(wq), per_head(wk), per_head(wv)],
                           axis=-1).astype(jnp.bfloat16)               # (nh,H,3d)
    bqkv = jnp.concatenate([bq.reshape(nh, 1, d), bk.reshape(nh, 1, d),
                            bv.reshape(nh, 1, d)],
                           axis=-1).astype(jnp.float32)                # (nh,1,3d)

    x_bf16 = hidden_states.astype(jnp.bfloat16)
    mask3 = attention_mask.reshape(B, 1, S).astype(jnp.float32)

    kernel = functools.partial(_attn_head_kernel, head_size=d)

    grid_spec = pltpu.PrefetchScalarGridSpec(
        num_scalar_prefetch=0,
        grid=(B, nh),
        in_specs=[
            pl.BlockSpec((1, S, H), lambda b, h: (b, 0, 0)),        # x (bf16)
            pl.BlockSpec((1, 1, S), lambda b, h: (b, 0, 0)),        # mask
            pl.BlockSpec((1, H, 3 * d), lambda b, h: (h, 0, 0)),    # packed W_h
            pl.BlockSpec((1, 1, 3 * d), lambda b, h: (h, 0, 0)),    # packed b_h
        ],
        out_specs=[
            pl.BlockSpec((1, 1, S, d), lambda b, h: (b, h, 0, 0)),  # ctx head
            pl.BlockSpec((1, 1, S, S), lambda b, h: (b, h, 0, 0)),  # probs
        ],
    )

    ctx_heads, probs = pl.pallas_call(
        kernel,
        out_shape=(jax.ShapeDtypeStruct((B, nh, S, d), jnp.float32),
                   jax.ShapeDtypeStruct((B, nh, S, S), jnp.float32)),
        grid_spec=grid_spec,
        compiler_params=pltpu.CompilerParams(
            dimension_semantics=("parallel", "parallel")),
    )(x_bf16, mask3, wqkv, bqkv)

    # Head merge is pure layout plumbing; keep it on the XLA side (lane-dense).
    context = ctx_heads.transpose(0, 2, 1, 3).reshape(B, S, H)
    return context, probs


def _reference(hidden_states, attention_mask, wq, bq, wk, bk, wv, bv, nh):
    B, S, H = hidden_states.shape
    d = H // nh
    q = hidden_states @ wq.T + bq
    k = hidden_states @ wk.T + bk
    v = hidden_states @ wv.T + bv

    def split(x):  # [B,S,H] -> [B,nh,S,d]
        return x.reshape(B, S, nh, d).transpose(0, 2, 1, 3)

    qh, kh, vh = split(q), split(k), split(v)
    scores = jnp.einsum("bhqd,bhkd->bhqk", qh, kh) / math.sqrt(d)
    scores = scores + attention_mask
    probs = jax.nn.softmax(scores, axis=-1)
    ctx = jnp.einsum("bhqk,bhkd->bhqd", probs, vh)
    ctx = ctx.transpose(0, 2, 1, 3).reshape(B, S, H)
    return ctx, probs


if __name__ == "__main__":
    B, S, H, NH = 2, 8, 32, 4

    key = jax.random.PRNGKey(0)
    k_x, k_wq, k_wk, k_wv, k_bq, k_bk, k_bv = jax.random.split(key, 7)

    hidden = jax.random.normal(k_x, (B, S, H), dtype=jnp.float32)

    # Deterministic parameter init (PyTorch Linear convention: weight [out, in]).
    scale = 1.0 / math.sqrt(H)
    wq = jax.random.uniform(k_wq, (H, H), jnp.float32, -scale, scale)
    wk = jax.random.uniform(k_wk, (H, H), jnp.float32, -scale, scale)
    wv = jax.random.uniform(k_wv, (H, H), jnp.float32, -scale, scale)
    bq = jax.random.uniform(k_bq, (H,), jnp.float32, -scale, scale)
    bk = jax.random.uniform(k_bk, (H,), jnp.float32, -scale, scale)
    bv = jax.random.uniform(k_bv, (H,), jnp.float32, -scale, scale)

    # BERT-style additive mask: batch 0 fully visible, batch 1 masks last 3 keys.
    valid = jnp.array([[1] * S, [1] * (S - 3) + [0] * 3], dtype=jnp.float32)
    attention_mask = ((1.0 - valid) * -10000.0).reshape(B, 1, 1, S)

    ctx, probs = self_attention(hidden, attention_mask,
                                wq, bq, wk, bk, wv, bv, NH)
    jax.block_until_ready((ctx, probs))

    ctx_ref, probs_ref = _reference(hidden, attention_mask,
                                    wq, bq, wk, bk, wv, bv, NH)
    # bf16 MXU inputs + approx reciprocal => compare with bf16-level tolerance.
    assert jnp.allclose(ctx, ctx_ref, atol=2e-2, rtol=2e-2)
    assert jnp.allclose(probs, probs_ref, atol=2e-2, rtol=2e-2)

    print("KERNEL_OK")
</pallas_src>

<mosaic_0001>
module attributes {stable_mosaic.version = 11 : i64} {
  func.func @_attn_head_kernel(%arg0: i32, %arg1: i32, %arg2: memref<1x8x32xbf16, #tpu.memory_space<vmem>>, %arg3: memref<1x1x8xf32, #tpu.memory_space<vmem>>, %arg4: memref<1x32x24xbf16, #tpu.memory_space<vmem>>, %arg5: memref<1x1x24xf32, #tpu.memory_space<vmem>>, %arg6: memref<1x1x8x8xf32, #tpu.memory_space<vmem>>, %arg7: memref<1x1x8x8xf32, #tpu.memory_space<vmem>>) attributes {dimension_semantics = [#tpu.dimension_semantics<parallel>, #tpu.dimension_semantics<parallel>], iteration_bounds = array<i64: 2, 4>, scalar_prefetch = 0 : i64, scratch_operands = 0 : i64, tpu.core_type = #tpu.core_type<tc>, window_params = [{transform_indices = @transform_0, window_bounds = array<i64: 1, 8, 32>}, {transform_indices = @transform_1, window_bounds = array<i64: 1, 1, 8>}, {transform_indices = @transform_2, window_bounds = array<i64: 1, 32, 24>}, {transform_indices = @transform_3, window_bounds = array<i64: 1, 1, 24>}, {transform_indices = @transform_4, window_bounds = array<i64: 1, 1, 8, 8>}, {transform_indices = @transform_5, window_bounds = array<i64: 1, 1, 8, 8>}]} {
    %c0 = arith.constant 0 : index
    %c0_0 = arith.constant 0 : index
    %c0_1 = arith.constant 0 : index
    %0 = vector.load %arg2[%c0, %c0_0, %c0_1] : memref<1x8x32xbf16, #tpu.memory_space<vmem>>, vector<1x8x32xbf16>
    %1 = vector.shape_cast %0 : vector<1x8x32xbf16> to vector<8x32xbf16>
    %c0_2 = arith.constant 0 : index
    %c0_3 = arith.constant 0 : index
    %c0_4 = arith.constant 0 : index
    %2 = vector.load %arg4[%c0_2, %c0_3, %c0_4] : memref<1x32x24xbf16, #tpu.memory_space<vmem>>, vector<1x32x24xbf16>
    %3 = vector.shape_cast %2 : vector<1x32x24xbf16> to vector<32x24xbf16>
    %c0_5 = arith.constant 0 : index
    %c0_6 = arith.constant 0 : index
    %c0_7 = arith.constant 0 : index
    %4 = vector.load %arg5[%c0_5, %c0_6, %c0_7] : memref<1x1x24xf32, #tpu.memory_space<vmem>>, vector<1x1x24xf32>
    %5 = vector.shape_cast %4 : vector<1x1x24xf32> to vector<1x24xf32>
    %cst = arith.constant dense<0.000000e+00> : vector<8x24xf32>
    %6 = tpu.matmul %1, %3, %cst {dimension_numbers = #tpu.dot_dimension_numbers<[1], [0], [0], [1], [0, 0, 1, 1], [], []>} : vector<8x32xbf16>, vector<32x24xbf16>, vector<8x24xf32> -> vector<8x24xf32>
    %7 = vector.broadcast %5 : vector<1x24xf32> to vector<8x24xf32>
    %8 = arith.addf %6, %7 : vector<8x24xf32>
    %9 = vector.extract_strided_slice %8 {offsets = [0, 0], sizes = [8, 8], strides = [1, 1]} : vector<8x24xf32> to vector<8x8xf32>
    %cst_8 = arith.constant 0.353553385 : f32
    %10 = vector.broadcast %cst_8 : f32 to vector<8x8xf32>
    %11 = arith.mulf %9, %10 : vector<8x8xf32>
    %12 = arith.truncf %11 : vector<8x8xf32> to vector<8x8xbf16>
    %13 = vector.extract_strided_slice %8 {offsets = [0, 8], sizes = [8, 8], strides = [1, 1]} : vector<8x24xf32> to vector<8x8xf32>
    %14 = arith.truncf %13 : vector<8x8xf32> to vector<8x8xbf16>
    %15 = vector.extract_strided_slice %8 {offsets = [0, 16], sizes = [8, 8], strides = [1, 1]} : vector<8x24xf32> to vector<8x8xf32>
    %16 = arith.truncf %15 : vector<8x8xf32> to vector<8x8xbf16>
    %cst_9 = arith.constant dense<0.000000e+00> : vector<8x8xf32>
    %17 = tpu.matmul %12, %14, %cst_9 {dimension_numbers = #tpu.dot_dimension_numbers<[1], [1], [0], [0], [0, 0, 1, 0], [], []>} : vector<8x8xbf16>, vector<8x8xbf16>, vector<8x8xf32> -> vector<8x8xf32>
    %c0_10 = arith.constant 0 : index
    %c0_11 = arith.constant 0 : index
    %c0_12 = arith.constant 0 : index
    %18 = vector.load %arg3[%c0_10, %c0_11, %c0_12] : memref<1x1x8xf32, #tpu.memory_space<vmem>>, vector<1x1x8xf32>
    %19 = vector.shape_cast %18 : vector<1x1x8xf32> to vector<1x8xf32>
    %20 = vector.broadcast %19 : vector<1x8xf32> to vector<8x8xf32>
    %21 = arith.addf %17, %20 : vector<8x8xf32>
    %cst_13 = arith.constant dense<0xFF800000> : vector<8xf32>
    %22 = vector.multi_reduction <maximumf>, %21, %cst_13 [1] : vector<8x8xf32> to vector<8xf32>
    %23 = vector.shape_cast %22 : vector<8xf32> to vector<8x1xf32>
    %24 = vector.broadcast %23 : vector<8x1xf32> to vector<8x8xf32>
    %25 = arith.subf %21, %24 : vector<8x8xf32>
    %26 = math.exp %25 : vector<8x8xf32>
    %cst_14 = arith.constant dense<0.000000e+00> : vector<8xf32>
    %27 = vector.multi_reduction <add>, %26, %cst_14 [1] : vector<8x8xf32> to vector<8xf32>
    %28 = vector.shape_cast %27 : vector<8xf32> to vector<8x1xf32>
    %29 = tpu.reciprocal %28 {approx = true} : vector<8x1xf32> -> vector<8x1xf32>
    %30 = vector.broadcast %29 : vector<8x1xf32> to vector<8x8xf32>
    %31 = arith.mulf %26, %30 : vector<8x8xf32>
    %c0_15 = arith.constant 0 : index
    %c0_16 = arith.constant 0 : index
    %c0_17 = arith.constant 0 : index
    %c0_18 = arith.constant 0 : index
    %32 = vector.load %arg7[%c0_15, %c0_16, %c0_17, %c0_18] : memref<1x1x8x8xf32, #tpu.memory_space<vmem>>, vector<1x1x8x8xf32>
    %33 = vector.shape_cast %32 : vector<1x1x8x8xf32> to vector<8x8xf32>
    %34 = vector.shape_cast %31 : vector<8x8xf32> to vector<1x1x8x8xf32>
    tpu.vector_store %arg7[%c0_15, %c0_16, %c0_17, %c0_18], %34 {strides = array<i32>} : memref<1x1x8x8xf32, #tpu.memory_space<vmem>>, vector<1x1x8x8xf32>,
    %35 = arith.truncf %31 : vector<8x8xf32> to vector<8x8xbf16>
    %cst_19 = arith.constant dense<0.000000e+00> : vector<8x8xf32>
    %36 = tpu.matmul %35, %16, %cst_19 {dimension_numbers = #tpu.dot_dimension_numbers<[1], [0], [0], [1], [0, 0, 1, 1], [], []>} : vector<8x8xbf16>, vector<8x8xbf16>, vector<8x8xf32> -> vector<8x8xf32>
    %c0_20 = arith.constant 0 : index
    %c0_21 = arith.constant 0 : index
    %c0_22 = arith.constant 0 : index
    %c0_23 = arith.constant 0 : index
    %37 = vector.load %arg6[%c0_20, %c0_21, %c0_22, %c0_23] : memref<1x1x8x8xf32, #tpu.memory_space<vmem>>, vector<1x1x8x8xf32>
    %38 = vector.shape_cast %37 : vector<1x1x8x8xf32> to vector<8x8xf32>
    %39 = vector.shape_cast %36 : vector<8x8xf32> to vector<1x1x8x8xf32>
    tpu.vector_store %arg6[%c0_20, %c0_21, %c0_22, %c0_23], %39 {strides = array<i32>} : memref<1x1x8x8xf32, #tpu.memory_space<vmem>>, vector<1x1x8x8xf32>,
    return
  }
  func.func @transform_0(%arg0: i32, %arg1: i32) -> (i32, i32, i32) {
    %c0_i32 = arith.constant 0 : i32
    %c0_i32_0 = arith.constant 0 : i32
    %c0_i32_1 = arith.constant 0 : i32
    return %arg0, %c0_i32, %c0_i32_0 : i32, i32, i32
  }
  func.func @transform_1(%arg0: i32, %arg1: i32) -> (i32, i32, i32) {
    %c0_i32 = arith.constant 0 : i32
    %c0_i32_0 = arith.constant 0 : i32
    %c0_i32_1 = arith.constant 0 : i32
    return %arg0, %c0_i32, %c0_i32_0 : i32, i32, i32
  }
  func.func @transform_2(%arg0: i32, %arg1: i32) -> (i32, i32, i32) {
    %c0_i32 = arith.constant 0 : i32
    %c0_i32_0 = arith.constant 0 : i32
    %c0_i32_1 = arith.constant 0 : i32
    return %arg1, %c0_i32, %c0_i32_0 : i32, i32, i32
  }
  func.func @transform_3(%arg0: i32, %arg1: i32) -> (i32, i32, i32) {
    %c0_i32 = arith.constant 0 : i32
    %c0_i32_0 = arith.constant 0 : i32
    %c0_i32_1 = arith.constant 0 : i32
    return %arg1, %c0_i32, %c0_i32_0 : i32, i32, i32
  }
  func.func @transform_4(%arg0: i32, %arg1: i32) -> (i32, i32, i32, i32) {
    %c0_i32 = arith.constant 0 : i32
    %c0_i32_0 = arith.constant 0 : i32
    %c0_i32_1 = arith.constant 0 : i32
    return %arg0, %arg1, %c0_i32, %c0_i32_0 : i32, i32, i32, i32
  }
  func.func @transform_5(%arg0: i32, %arg1: i32) -> (i32, i32, i32, i32) {
    %c0_i32 = arith.constant 0 : i32
    %c0_i32_0 = arith.constant 0 : i32
    %c0_i32_1 = arith.constant 0 : i32
    return %arg0, %arg1, %c0_i32, %c0_i32_0 : i32, i32, i32, i32
  }
}

</mosaic_0001>

<bundles_post_ra>
// kernel: tpu_custom_call.1
= control target key start
LH: loop header
LB: loop body
LE: loop exit
PB: predicated region body
PF: predicated region fallthrough
CT: control target
= control target key end

     0   :  { %s1012_s0 = inlined_call_operand.vmem [shape: bf16[2,8,32], index: 0, kind: input, shape index: {}]   ;;  %s1013_s1 = inlined_call_operand.vmem [shape: f32[2,1,8], index: 1, kind: input, shape index: {}]   ;;  %s1014_s2 = inlined_call_operand.vmem [shape: bf16[4,32,24], index: 2, kind: input, shape index: {}]   ;;  %s1015_s3 = inlined_call_operand.vmem [shape: f32[4,1,24], index: 3, kind: input, shape index: {}]   ;;  %s1016_s4 = inlined_call_operand.hbm [shape: f32[2,4,8,8], index: 4, kind: output, shape index: {0}]   ;;  %s1017_s5 = inlined_call_operand.hbm [shape: f32[2,4,8,8], index: 5, kind: output, shape index: {1}]  }
   0x1   :  { %1020 = sst [smem:[#allocation9_spill]] %s1012_s0 }
   0x2   :  { %1021 = sst [smem:[#allocation10_spill]] %s1013_s1 }
   0x3   :  { %11 = vsyncpa [#allocation3], 0 }
   0x4   :  { %13 = vsyncpa [#allocation3 + $0x1], 0 }
   0x5   :  { %14 = vsyncpa [#allocation5], 0 }
   0x6   :  { %16 = vsyncpa [#allocation5 + $0x1], 0  ;;  %s852_s18 = smov 0   ;;  %s854_s19 = smov 0  }
   0x7   :  { %s856_s20 = smov 0   ;;  %s858_s21 = smov 0  }
   0x8   :  { %s860_s22 = smov 0   ;;  %s862_s23 = smov 0  }
   0x9   :  { %s864_s24 = smov 0   ;;  %s866_s25 = smov 0  }
   0xa LB: > { %s576_s26 = sadd.s32 4294967295, %s818_s25   ;;  %s577_s27 = sadd.s32 4294967294, %s818_s25   ;;  %s818_s25 = sphi %s866_s25, %s22_s25   ;;  %s814_s24 = sphi %s864_s24, %s1035_s24   ;;  %s810_s23 = sphi %s862_s23, %s1034_s23   ;;  %s806_s22 = sphi %s860_s22, %s1033_s22   ;;  %s802_s21 = sphi %s858_s21, %s1032_s21   ;;  %s798_s20 = sphi %s856_s20, %s1031_s20   ;;  %s794_s19 = sphi %s854_s19, %s1030_s19   ;;  %s790_s18 = sphi %s852_s18, %s1029_s18  }
   0xb   : > { %s31_s28 = sadd.s32 1, %s810_s23  ;;  %s34_s29 = sadd.s32 1, %s814_s24 }
   0xc   : > { %p32_p0 = scmp.ge.s32.totalorder %s31_s28, 4  ;;  %p157_p1 = scmp.ne.s32.totalorder %s798_s20, %s794_s19 }
   0xd   : > { %p158_p2 = scmp.eq.s32.totalorder %s576_s26, 7  ;;  %p163_p5 = scmp.ne.s32.totalorder %s794_s19, %s790_s18 }
   0xe   : > { %s1037_s28 = smov (%p32_p0, %s31_s28), 0  ;;  %s1039_s29 = smov (!%p32_p0, %s34_s29), %s814_s24 }
   0xf   : > { %s143_s30 = ssub.s32 %s810_s23, %s1037_s28  ;;  %p903_p3 = por %p158_p2, %p157_p1 }
  0x10   : > { %p36_p4 = scmp.ge.s32.totalorder %s1039_s29, 2  ;;  %p164_p6 = scmp.eq.s32.totalorder %s577_s27, 7 }
  0x11   : > { %p580_p7 = scmp.ge.s32.totalorder %s818_s25, 1  ;;  %p237_p9 = scmp.lt.s32.totalorder %s818_s25, 9 }
  0x12   : > { %s1041_s29 = smov (%p36_p4, %s1039_s29), 0  ;;  %p912_p8 = por %p164_p6, %p163_p5 }
  0x13   : > { %1023 = sst [smem:[#allocation8_spill]] %s1041_s29  ;;  %s142_s8 = ssub.s32 %s814_s24, %s1041_s29 }
  0x14   : > { %s147_s9 = sadd.s32 1, %s798_s20  ;;  %s144_s10 = sor.u32 %s143_s30, %s142_s8 }
  0x15   : > { %p238_p10 = pnand %p580_p7, %p237_p9  ;;  %p145_p11 = scmp.eq.s32.totalorder %s144_s10, 0 }
  0x16   : > { %p287_p12 = scmp.lt.s32.totalorder (!%p238_p10), %s802_s21, 3  ;;  %p280_p13 = scmp.lt.s32.totalorder (!%p238_p10), %s806_s22, 1 }
  0x17   : > { %s921_s11 = scalar_select %p145_p11, %s798_s20, %s147_s9  }
  0x18   : > { %241 = sbr.rel (%p238_p10) target bundleno = 835 (0x343), region = 36  ;;  %s1025_s0 = sld [smem:[#allocation9_spill]] (!%p238_p10) }
  0x19   : > { %s1026_s1 = sld [smem:[#allocation10_spill]] (!%p238_p10)  ;;  %s599_s27 = sshll.u32 (!%p238_p10), %s806_s22, 2 }
  0x1d   : > { %s288_s12 = scalar_select %p287_p12, %s802_s21, 3  ;;  %vm317_vm0 = vcmask 261120   ;;  %vm344_vm1 = vcmask 64512   ;;  %vm382_vm2 = vcmask 1043456  }
  0x1e   : > { %s281_s13 = scalar_select %p280_p13, %s806_s22, 1 }
  0x1f   : > { %s605_s14 = sshll.u32 %s288_s12, 4  ;;  %s294_s17 = scalar_lea.vmem %s1015_s3, %s288_s12 }
  0x20   : > { %s291_s30 = scalar_lea.vmem %s1014_s2, %s605_s14  ;;  %s583_s8 = sshll.u32 %s281_s13, 2  ;;  %v686_v3 = vld [vmem:[%s294_s17] ss:$0 sm:$0xff] }
  0x21   : > { %v607_v0 = vld [vmem:[%s291_s30 + $0x8] sm:$0xff]  ;;  %v606_v1 = vld [vmem:[%s291_s30] sm:$0xff]  ;;  %s283_s29 = scalar_lea.vmem %s1025_s0, %s583_s8  ;;  %s286_s16 = scalar_lea.vmem %s1026_s1, %s281_s13 }
  0x22   : > { %327 = vmatpush.bf16.msra.mxu0 %v607_v0  ;;  %v296_v2 = vld [vmem:[%s283_s29] sm:$0xf]  ;;  %s820_s14 = smov 120   ;;  %s821_s29 = smov 112  }
  0x23   : > { %v687_v12 = vld [vmem:[%s286_s16] ss:$0 sm:$0xff]  ;;  %s944_s13 = sand.u32 1, %s794_s19   ;;  %s416_s30 = sadd.s32 %s802_s21, %s599_s27 }
  0x24   : > { %s1019_s17 = sshll.u32 %s944_s13, 3  ;;  %s600_s8 = sshll.u32 %s416_s30, 3 }
  0x25   : > { %s279_s26 = scalar_lea.vmem [#allocation4], %s1019_s17  ;;  %s434_s15 = scalar_lea.hbm %s1017_s5, %s600_s8 }
  0x26   : > { %328 = vmatpush.bf16.msra.mxu0 %v606_v1  ;;  %s436_s12 = sshll.u32 %s279_s26, 4  ;;  %s438_s16 = sshll.u32 %s434_s15, 4  ;;  %s437_s12 = int_to_ptr.vmem [resolvable:$true] %s436_s12  ;;  %s439_s16 = int_to_ptr.hbm [resolvable:$true] %s438_s16 }
  0x27   : > { %s712_s21 = scalar_lea.hbm %s1017_s5, 64 }
  0x29   : > { %594 = vmatmul.msk.bf16.vlgmr.msra.gmra.mxu0 %vm317_vm0, %v296_v2 }
  0xa6   : > { %v330_v4 = vpop.f32.mrf.mxu0 }
  0xa7   : > { %v331_v5 = vadd.f32 %v686_v3, %v330_v4 }
  0xa9   : > { %v336_v6 = vpack.c.bf16 %v331_v5, %v331_v5  ;;  %v334_v10 = vmul.f32 0.35355338, %v331_v5 }
  0xab   : > { %342 = vrot.lane.b32.xlu0 %v336_v6, %s820_s14  ;;  %v335_v11 = vpack.c.bf16 %v334_v10, %v334_v10  ;;  %s406_s14 = scalar_lea.sflag [#allocation5], %s944_s13 }
  0xae   : > { %v332_v7 = vpop.f32.mrf.mxu0 }
 0x11d   : > { %v343_v8 = vpop.permute.xlu0 %342 }
 0x11e   : > { %v349_v9 = vsel %vm344_vm1, %v343_v8, 0 }
 0x11f   : > { %358 = vmatpush.bf16.xpose.msra.mxu1 %v349_v9 }
 0x126   : > { %595 = vmatmul.msk.bf16.vlgmr.msra.gmra.mxu1 %vm344_vm1, %v335_v11 }
 0x1a3   : > { %v360_v13 = vpop.f32.mrf.mxu1 }
 0x1a4   : > { %v361_v14 = vadd.f32 %v687_v12, %v360_v13 }
 0x1a6   : > { %v364_v15 = vsel %vm344_vm1, %v361_v14, -inf }
 0x1a7   : > { %365 = vmax.xlane.f32.xlu0 %v364_v15 }
 0x1ab   : > { %v362_v16 = vpop.f32.mrf.mxu1 }
 0x21a   : > { %v366_v17 = vpop.xlane.xlu0 %365 }
 0x21b   : > { %v367_v18 = vsub.f32 %v361_v14, %v366_v17 }
 0x21d   : > { %v368_v19 = vmul.f32 1.442695, %v367_v18 }
 0x21f   : > { %688 = vpow2.f32 %v368_v19 }
 0x225   : > { %v689_v20 = vpop.eup %688 }
 0x226   : > { %v370_v21 = vsel %vm344_vm1, %v689_v20, 0.0 }
 0x227   : > { %371 = vadd.xlane.f32.xlu1 %v370_v21 }
 0x240   : > { %377 = vrot.lane.b32.xlu1 %v336_v6, %s821_s29  ;;  %s706_s29 = sshra.s32 %s439_s16, 4  ;;  %s707_s29 = int_to_ptr.hbm [resolvable:$true] %s706_s29 }
 0x241   : > { %s708_s17 = scalar_lea.hbm %s707_s29, 8  ;;  %p713_p4 = scmp.lt.s32.totalorder %s707_s29, %s1017_s5 }
 0x242   : > { %p709_p0 = scmp.ne.s32.totalorder %s707_s29, %s708_s17  ;;  %p714_p5 = scmp.lt.s32.totalorder %s712_s21, %s708_s17 }
 0x244   : > { %p710_p1 = pnand %p709_p0, %p903_p3  ;;  %p715_p6 = por %p714_p5, %p713_p4 }
 0x246   : > { %p711_p2 = pneg %p710_p1 }
 0x248   : > { %p716_p7 = pnand %p715_p6, %p711_p2 }
 0x29a   : > { %v372_v22 = vpop.xlane.xlu1 %371 }
 0x29b   : > { %690 = vrcp.f32 %v372_v22 }
 0x2a1   : > { %v691_v23 = vpop.eup %690 }
 0x2a2   : > { %v374_v24 = vmul.f32 %v691_v23, %v689_v20 }
 0x2a4   : > { %375 = vst.msk [vmem:[%s279_s26] sm:$0xff] %vm344_vm1, %v374_v24  ;;  %v376_v27 = vpack.c.bf16 %v374_v24, %v374_v24 }
 0x2b2   : > { %v378_v25 = vpop.permute.xlu1 %377 }
 0x2b3   : > { %v384_v26 = vsel %vm382_vm2, %v378_v25, 0 }
 0x2b4   : > { %393 = vmatpush.bf16.msra.mxu2 %v384_v26 }
 0x2b7   : > { %596 = vmatmul.msk.bf16.vlgmr.msra.gmra.mxu2 %vm344_vm1, %v376_v27 }
 0x2b8   : > { %719 = shalt.err (!%p716_p7)
}
 0x2b9   : > { %609 = dma.vmem_to_hbm [thread:$0]  (%p903_p3), %s437_s12, 128, %s439_s16, %s406_s14  }
 0x2ba   : > { %s418_s10 = scalar_lea.hbm %s1016_s4, %s600_s8  ;;  %s1027_s0 = sshll.u32 %s944_s13, 3 }
 0x2bb   : > { %s272_s15 = scalar_lea.vmem [#allocation2], %s1027_s0  ;;  %s422_s1 = sshll.u32 %s418_s10, 4  ;;  %s423_s1 = int_to_ptr.hbm [resolvable:$true] %s422_s1 }
 0x2bc   : > { %s420_s22 = sshll.u32 %s272_s15, 4  ;;  %s401_s17 = scalar_lea.sflag [#allocation3], %s944_s13  ;;  %s421_s22 = int_to_ptr.vmem [resolvable:$true] %s420_s22 }
 0x2bd   : > { %s734_s29 = sshra.s32 %s423_s1, 4  ;;  %s740_s8 = scalar_lea.hbm %s1016_s4, 64  ;;  %s735_s29 = int_to_ptr.hbm [resolvable:$true] %s734_s29 }
 0x2be   : > { %s736_s21 = scalar_lea.hbm %s735_s29, 8  ;;  %p741_p12 = scmp.lt.s32.totalorder %s735_s29, %s1016_s4 }
 0x2bf   : > { %p737_p9 = scmp.ne.s32.totalorder %s735_s29, %s736_s21  ;;  %p742_p13 = scmp.lt.s32.totalorder %s740_s8, %s736_s21 }
 0x2c1   : > { %p738_p10 = pnand %p737_p9, %p903_p3  ;;  %p743_p0 = por %p742_p13, %p741_p12 }
 0x2c3   : > { %p739_p11 = pneg %p738_p10 }
 0x2c5   : > { %p744_p1 = pnand %p743_p0, %p739_p11 }
 0x33a   : > { %v395_v28 = vpop.f32.mrf.mxu2 }
 0x33b   : > { %399 = vst.msk [vmem:[%s272_s15] sm:$0xff] %vm344_vm1, %v395_v28 }
 0x33c   : > { %747 = shalt.err (!%p744_p1)
}
 0x33d   : > { %608 = dma.vmem_to_hbm [thread:$0]  (%p903_p3), %s421_s22, 128, %s423_s1, %s401_s17  }
 0x342   : > { %v397_v29 = vpop.f32.mrf.mxu2 }
 0x343 PF: > { %p619_p2 = scmp.ge.s32.totalorder %s818_s25, 2  ;;  %s450_s13 = sand.u32 1, %s790_s18  }
 0x344   : > { %s451_s30 = scalar_lea.sflag [#allocation3], %s450_s13 }
 0x345   : > { %p613_p4 = pnand %p619_p2, %p912_p8 }
 0x347   : > { %p614_p5 = pneg %p613_p4 }
 0x349   : > { %781 = dma.done.wait (%p614_p5), %s451_s30, 128  }
 0x34a   : > { %783 = vsyncadd (%p614_p5), %s451_s30, 4294967168  ;;  %s461_s26 = scalar_lea.sflag [#allocation5], %s450_s13 }
 0x34b   : > { %785 = dma.done.wait (%p614_p5), %s461_s26, 128  }
 0x34c   : > { %787 = vsyncadd (%p614_p5), %s461_s26, 4294967168  ;;  %s22_s25 = sadd.s32 1, %s818_s25   ;;  %s1028_s1 = sld [smem:[#allocation8_spill]] }
 0x34d   : > { %p19_p6 = scmp.ge.s32.totalorder %s22_s25, 10   ;;  %s1029_s18 = smov %s794_s19 }
 0x34e   : > { %s1030_s19 = smov %s798_s20  ;;  %s1031_s20 = smov %s921_s11 }
 0x34f   : > { %s1032_s21 = smov %s810_s23  ;;  %s1033_s22 = smov %s814_s24 }
 0x350   : > { %s1034_s23 = smov %s1037_s28  ;;  %21 = sbr.rel (!%p19_p6) target bundleno = 10 (0xa), region = 97 }
 0x352   : > { %s1035_s24 = smov %s1028_s1 }
 0x355   :  { %467 = vsyncpa [#allocation3], 1 }
 0x356   :  { %469 = vsyncpa [#allocation3 + $0x1], 1 }
 0x357   :  { %470 = vsyncpa [#allocation5], 1 }
 0x358   :  { %472 = vsyncpa [#allocation5 + $0x1], 1 }

</bundles_post_ra>
